<compile_context>
chip_gen: v5e
topology: v5e:2x2
jax: 0.10.0
libtpu: 0.0.40
codegen_flags: <defaults>
</compile_context>

<pallas_src>
import jax
import jax.numpy as jnp
from jax.experimental import pallas as pl
from jax.experimental.pallas import tpu as pltpu

MODALITIES = ("text", "image", "audio")
INPUT_DIMS = {"text": 48, "image": 64, "audio": 32}
HIDDEN = 32
M = len(MODALITIES)
NUM_GLOBAL = 10
NUM_USER = 6
BATCH = 8
LN_EPS = 1e-5
LANES = 128
D_IN = sum(INPUT_DIMS[m] for m in MODALITIES)  # 144

# ---- weight-slab row offsets (all multiples of 8; slab is 128 lanes wide) ----
R_PROJ = 0        # [144, 128] block-diagonal per-modality projections (cols 0:96 used)
R_WA1 = 144       # [128, 32]  attention Linear1 (rows 96:128 zero)
R_WA2 = 272       # [32, 3]    attention Linear2
R_EXPAND = 304    # [3, 128]   attn -> lane-dense fusion mask (ones per H-block)
R_WF3 = 312       # [128, 32]  final proj weight stacked 3x (rows 96:128 zero)
R_WH1 = 440       # [32, 64]   merged head Linear1 (wg1 | wu1)
R_WH2 = 472       # [64, 128]  merged head Linear2 (block-diag wg2 / wu2)
R_PLACE = 536     # [3, 128]   attn placement into output lanes 16:19
W_ROWS = 544

# ---- bias-slab rows ----
(B_PROJ, B_A1, B_LNA_W, B_LNA_B, B_A2, B_F, B_LNF_W, B_LNF_B, B_H1, B_H2) = range(10)
B_ROWS = 16

# ---- output lane offsets (single lane-dense [B, 128] output) ----
O_GLOBAL = 0
O_USER = NUM_GLOBAL                 # 10
O_ATTN = NUM_GLOBAL + NUM_USER      # 16


def _layernorm(x, w, b):
    mu = jnp.mean(x, axis=-1, keepdims=True)
    var = jnp.mean((x - mu) ** 2, axis=-1, keepdims=True)
    return (x - mu) * jax.lax.rsqrt(var + LN_EPS) * w + b


def _multitask_fusion_kernel(x_ref, w_ref, b_ref, out_ref):
    H = HIDDEN
    x = x_ref[...]                                                    # [bb, 144]

    # 1) fused per-modality projections (block-diagonal weight) -> lane-dense [bb, 128]
    #    lanes 0:96 hold proj(text)|proj(image)|proj(audio); lanes 96:128 stay exactly 0.
    p = jnp.dot(x, w_ref[R_PROJ:R_PROJ + D_IN, :],
                preferred_element_type=jnp.float32) + b_ref[B_PROJ:B_PROJ + 1, :]

    # 2) attention MLP: Linear -> LayerNorm -> ReLU -> Linear -> Softmax
    h = jnp.dot(p, w_ref[R_WA1:R_WA1 + LANES, 0:H],
                preferred_element_type=jnp.float32) + b_ref[B_A1:B_A1 + 1, 0:H]
    h = _layernorm(h, b_ref[B_LNA_W:B_LNA_W + 1, 0:H], b_ref[B_LNA_B:B_LNA_B + 1, 0:H])
    h = jnp.maximum(h, 0.0)
    logits = jnp.dot(h, w_ref[R_WA2:R_WA2 + H, 0:M],
                     preferred_element_type=jnp.float32) + b_ref[B_A2:B_A2 + 1, 0:M]
    logits = logits - jnp.max(logits, axis=-1, keepdims=True)
    e = jnp.exp(logits)
    attn = e / jnp.sum(e, axis=-1, keepdims=True)                     # [bb, 3]

    # 3) attention-weighted fusion, lane-dense on the MXU: attn @ E broadcasts each
    #    attention weight across its H-block; the 3-block sum is folded into the
    #    3x-stacked final-projection weight below (no lane slices / XLU broadcasts).
    attn_mask = jnp.dot(attn, w_ref[R_EXPAND:R_EXPAND + M, :],
                        preferred_element_type=jnp.float32)           # [bb, 128]
    weighted = p * attn_mask

    # 4) final projection (Dropout is identity in eval mode)
    f = jnp.dot(weighted, w_ref[R_WF3:R_WF3 + LANES, 0:H],
                preferred_element_type=jnp.float32) + b_ref[B_F:B_F + 1, 0:H]
    f = _layernorm(f, b_ref[B_LNF_W:B_LNF_W + 1, 0:H], b_ref[B_LNF_B:B_LNF_B + 1, 0:H])
    f = jnp.maximum(f, 0.0)

    # 5) merged task heads -> single lane-dense [bb, 128] output
    hh = jnp.maximum(
        jnp.dot(f, w_ref[R_WH1:R_WH1 + H, 0:2 * H],
                preferred_element_type=jnp.float32) + b_ref[B_H1:B_H1 + 1, 0:2 * H],
        0.0)                                                          # [bb, 64]
    head = jnp.dot(hh, w_ref[R_WH2:R_WH2 + 2 * H, :],
                   preferred_element_type=jnp.float32) + b_ref[B_H2:B_H2 + 1, :]
    attn_placed = jnp.dot(attn, w_ref[R_PLACE:R_PLACE + M, :],
                          preferred_element_type=jnp.float32)         # attn at lanes 16:19
    out_ref[...] = head + attn_placed                                 # one unmasked 128-lane store


def pack_params(params):
    """Pack all module parameters into (weight_slab [544,128], bias_slab [16,128]).

    Done once, wrapper-side (plain XLA ops); the kernel only sees the two slabs.
    """
    H = HIDDEN
    W = jnp.zeros((W_ROWS, LANES), jnp.float32)
    r = R_PROJ
    for i, m in enumerate(MODALITIES):
        d = INPUT_DIMS[m]
        W = W.at[r:r + d, i * H:(i + 1) * H].set(params[f"wp_{m}"])
        r += d
    W = W.at[R_WA1:R_WA1 + M * H, 0:H].set(params["wa1"])
    W = W.at[R_WA2:R_WA2 + H, 0:M].set(params["wa2"])
    for i in range(M):
        W = W.at[R_EXPAND + i, i * H:(i + 1) * H].set(1.0)
    for i in range(M):
        W = W.at[R_WF3 + i * H:R_WF3 + (i + 1) * H, 0:H].set(params["wf"])
    W = W.at[R_WH1:R_WH1 + H, 0:H].set(params["wg1"])
    W = W.at[R_WH1:R_WH1 + H, H:2 * H].set(params["wu1"])
    W = W.at[R_WH2:R_WH2 + H, O_GLOBAL:O_GLOBAL + NUM_GLOBAL].set(params["wg2"])
    W = W.at[R_WH2 + H:R_WH2 + 2 * H, O_USER:O_USER + NUM_USER].set(params["wu2"])
    for i in range(M):
        W = W.at[R_PLACE + i, O_ATTN + i].set(1.0)

    Bm = jnp.zeros((B_ROWS, LANES), jnp.float32)
    for i, m in enumerate(MODALITIES):
        Bm = Bm.at[B_PROJ, i * H:(i + 1) * H].set(params[f"bp_{m}"][0])
    Bm = Bm.at[B_A1, 0:H].set(params["ba1"][0])
    Bm = Bm.at[B_LNA_W, 0:H].set(params["ln_a_w"][0])
    Bm = Bm.at[B_LNA_B, 0:H].set(params["ln_a_b"][0])
    Bm = Bm.at[B_A2, 0:M].set(params["ba2"][0])
    Bm = Bm.at[B_F, 0:H].set(params["bf"][0])
    Bm = Bm.at[B_LNF_W, 0:H].set(params["ln_f_w"][0])
    Bm = Bm.at[B_LNF_B, 0:H].set(params["ln_f_b"][0])
    Bm = Bm.at[B_H1, 0:H].set(params["bg1"][0])
    Bm = Bm.at[B_H1, H:2 * H].set(params["bu1"][0])
    Bm = Bm.at[B_H2, O_GLOBAL:O_GLOBAL + NUM_GLOBAL].set(params["bg2"][0])
    Bm = Bm.at[B_H2, O_USER:O_USER + NUM_USER].set(params["bu2"][0])
    return W, Bm


def multitask_fusion(embeddings, packed):
    """Whole forward in one Pallas kernel. Returns (global_logits, user_logits, attn)."""
    w_slab, b_slab = packed
    # Keep batch on the sublane axis, features on the lane axis; pad B to a multiple of 8
    # so no sub-(8,128) blocks appear (guard per perf review).
    x_cat = jnp.concatenate([embeddings[m] for m in MODALITIES], axis=-1).astype(jnp.float32)
    B = x_cat.shape[0]
    Bp = ((B + 7) // 8) * 8
    if Bp != B:
        x_cat = jnp.pad(x_cat, ((0, Bp - B), (0, 0)))
    bb = min(Bp, 256)                      # batch tile; grid shards batch across cores (v7x)
    grid = (pl.cdiv(Bp, bb),)

    matmul_cols = (D_IN * LANES + LANES * HIDDEN + HIDDEN * M + M * LANES
                   + LANES * HIDDEN + HIDDEN * 2 * HIDDEN + 2 * HIDDEN * LANES + M * LANES)
    cost = pl.CostEstimate(
        flops=2 * Bp * matmul_cols,
        transcendentals=8 * Bp,            # exp (softmax) + rsqrt (two LayerNorms)
        bytes_accessed=4 * (x_cat.size + w_slab.size + b_slab.size + Bp * LANES),
    )

    out = pl.pallas_call(
        _multitask_fusion_kernel,
        out_shape=jax.ShapeDtypeStruct((Bp, LANES), jnp.float32),
        grid=grid,
        in_specs=[
            pl.BlockSpec((bb, D_IN), lambda i: (i, 0)),
            pl.BlockSpec((W_ROWS, LANES), lambda i: (0, 0)),
            pl.BlockSpec((B_ROWS, LANES), lambda i: (0, 0)),
        ],
        out_specs=pl.BlockSpec((bb, LANES), lambda i: (i, 0)),
        compiler_params=pltpu.CompilerParams(dimension_semantics=("parallel",)),
        cost_estimate=cost,
    )(x_cat, w_slab, b_slab)

    global_logits = out[:B, O_GLOBAL:O_GLOBAL + NUM_GLOBAL]
    user_logits = out[:B, O_USER:O_USER + NUM_USER]
    attn = out[:B, O_ATTN:O_ATTN + M]
    return global_logits, user_logits, attn


def make_params(key):
    """Deterministic synthetic parameters (shapes follow the PyTorch __init__);
    linear weights stored as [in, out] (transposed vs. nn.Linear.weight)."""
    H = HIDDEN
    params = {}

    def nxt():
        nonlocal key
        key, sub = jax.random.split(key)
        return sub

    def lin(din, dout):
        w = jax.random.normal(nxt(), (din, dout), jnp.float32) * 0.05
        b = jax.random.normal(nxt(), (1, dout), jnp.float32) * 0.05
        return w, b

    for m in MODALITIES:
        params[f"wp_{m}"], params[f"bp_{m}"] = lin(INPUT_DIMS[m], H)

    params["wa1"], params["ba1"] = lin(H * M, H)
    params["ln_a_w"] = 1.0 + 0.1 * jax.random.normal(nxt(), (1, H), jnp.float32)
    params["ln_a_b"] = 0.1 * jax.random.normal(nxt(), (1, H), jnp.float32)
    params["wa2"], params["ba2"] = lin(H, M)

    params["wf"], params["bf"] = lin(H, H)
    params["ln_f_w"] = 1.0 + 0.1 * jax.random.normal(nxt(), (1, H), jnp.float32)
    params["ln_f_b"] = 0.1 * jax.random.normal(nxt(), (1, H), jnp.float32)

    params["wg1"], params["bg1"] = lin(H, H)
    params["wg2"], params["bg2"] = lin(H, NUM_GLOBAL)
    params["wu1"], params["bu1"] = lin(H, H)
    params["wu2"], params["bu2"] = lin(H, NUM_USER)
    return params


def _reference(embeddings, params):
    """Pure-JAX reference mirroring the PyTorch forward (eval mode)."""
    H = HIDDEN
    proj = {m: embeddings[m] @ params[f"wp_{m}"] + params[f"bp_{m}"] for m in MODALITIES}
    concat = jnp.concatenate([proj[m] for m in MODALITIES], axis=-1)
    h = concat @ params["wa1"] + params["ba1"]
    h = _layernorm(h, params["ln_a_w"], params["ln_a_b"])
    h = jnp.maximum(h, 0.0)
    attn = jax.nn.softmax(h @ params["wa2"] + params["ba2"], axis=-1)
    fused = jnp.zeros((concat.shape[0], H), jnp.float32)
    for i, m in enumerate(MODALITIES):
        fused = fused + attn[:, i:i + 1] * proj[m]
    f = fused @ params["wf"] + params["bf"]
    f = _layernorm(f, params["ln_f_w"], params["ln_f_b"])
    f = jnp.maximum(f, 0.0)
    g = jnp.maximum(f @ params["wg1"] + params["bg1"], 0.0) @ params["wg2"] + params["bg2"]
    u = jnp.maximum(f @ params["wu1"] + params["bu1"], 0.0) @ params["wu2"] + params["bu2"]
    return g, u, attn


if __name__ == "__main__":
    key = jax.random.PRNGKey(0)
    key, k_text, k_image, k_audio, k_params = jax.random.split(key, 5)
    embeddings = {
        "text": jax.random.normal(k_text, (BATCH, INPUT_DIMS["text"]), jnp.float32),
        "image": jax.random.normal(k_image, (BATCH, INPUT_DIMS["image"]), jnp.float32),
        "audio": jax.random.normal(k_audio, (BATCH, INPUT_DIMS["audio"]), jnp.float32),
    }
    params = make_params(k_params)
    packed = jax.tree.map(jax.block_until_ready, pack_params(params))

    # TODO(synk): optional `mask` argument is unused by the reference forward; not implemented.
    global_logits, user_logits, attn_weights = jax.block_until_ready(
        multitask_fusion(embeddings, packed))

    g_ref, u_ref, a_ref = _reference(embeddings, params)
    assert global_logits.shape == (BATCH, NUM_GLOBAL)
    assert user_logits.shape == (BATCH, NUM_USER)
    assert attn_weights.shape == (BATCH, M)
    assert jnp.allclose(global_logits, g_ref, rtol=1e-4, atol=1e-5)
    assert jnp.allclose(user_logits, u_ref, rtol=1e-4, atol=1e-5)
    assert jnp.allclose(attn_weights, a_ref, rtol=1e-4, atol=1e-5)

    print("KERNEL_OK")
</pallas_src>

<mosaic_0001>
module attributes {stable_mosaic.version = 11 : i64} {
  func.func @_multitask_fusion_kernel(%arg0: i32, %arg1: memref<8x144xf32, #tpu.memory_space<vmem>>, %arg2: memref<544x128xf32, #tpu.memory_space<vmem>>, %arg3: memref<16x128xf32, #tpu.memory_space<vmem>>, %arg4: memref<8x128xf32, #tpu.memory_space<vmem>>) attributes {dimension_semantics = [#tpu.dimension_semantics<parallel>], iteration_bounds = array<i64: 1>, scalar_prefetch = 0 : i64, scratch_operands = 0 : i64, tpu.core_type = #tpu.core_type<tc>, window_params = [{transform_indices = @transform_0, window_bounds = array<i64: 8, 144>}, {pipeline_mode = #tpu.pipeline_mode<synchronous>, transform_indices = @transform_1, window_bounds = array<i64: 544, 128>}, {pipeline_mode = #tpu.pipeline_mode<synchronous>, transform_indices = @transform_2, window_bounds = array<i64: 16, 128>}, {transform_indices = @transform_3, window_bounds = array<i64: 8, 128>}]} {
    %c0 = arith.constant 0 : index
    %c0_0 = arith.constant 0 : index
    %0 = vector.load %arg1[%c0, %c0_0] : memref<8x144xf32, #tpu.memory_space<vmem>>, vector<8x144xf32>
    %c0_1 = arith.constant 0 : index
    %c0_2 = arith.constant 0 : index
    %1 = vector.load %arg2[%c0_1, %c0_2] : memref<544x128xf32, #tpu.memory_space<vmem>>, vector<144x128xf32>
    %cst = arith.constant dense<0.000000e+00> : vector<8x128xf32>
    %2 = tpu.matmul %0, %1, %cst {dimension_numbers = #tpu.dot_dimension_numbers<[1], [0], [0], [1], [0, 0, 1, 1], [], []>} : vector<8x144xf32>, vector<144x128xf32>, vector<8x128xf32> -> vector<8x128xf32>
    %c0_3 = arith.constant 0 : index
    %c0_4 = arith.constant 0 : index
    %3 = vector.load %arg3[%c0_3, %c0_4] : memref<16x128xf32, #tpu.memory_space<vmem>>, vector<1x128xf32>
    %4 = vector.broadcast %3 : vector<1x128xf32> to vector<8x128xf32>
    %5 = arith.addf %2, %4 : vector<8x128xf32>
    %c144 = arith.constant 144 : index
    %c0_5 = arith.constant 0 : index
    %6 = vector.load %arg2[%c144, %c0_5] : memref<544x128xf32, #tpu.memory_space<vmem>>, vector<128x32xf32>
    %cst_6 = arith.constant dense<0.000000e+00> : vector<8x32xf32>
    %7 = tpu.matmul %5, %6, %cst_6 {dimension_numbers = #tpu.dot_dimension_numbers<[1], [0], [0], [1], [0, 0, 1, 1], [], []>} : vector<8x128xf32>, vector<128x32xf32>, vector<8x32xf32> -> vector<8x32xf32>
    %c1 = arith.constant 1 : index
    %c0_7 = arith.constant 0 : index
    %8 = vector.load %arg3[%c1, %c0_7] : memref<16x128xf32, #tpu.memory_space<vmem>>, vector<1x32xf32>
    %9 = vector.broadcast %8 : vector<1x32xf32> to vector<8x32xf32>
    %10 = arith.addf %7, %9 : vector<8x32xf32>
    %c2 = arith.constant 2 : index
    %c0_8 = arith.constant 0 : index
    %11 = vector.load %arg3[%c2, %c0_8] : memref<16x128xf32, #tpu.memory_space<vmem>>, vector<1x32xf32>
    %c3 = arith.constant 3 : index
    %c0_9 = arith.constant 0 : index
    %12 = vector.load %arg3[%c3, %c0_9] : memref<16x128xf32, #tpu.memory_space<vmem>>, vector<1x32xf32>
    %cst_10 = arith.constant dense<0.000000e+00> : vector<8xf32>
    %13 = vector.multi_reduction <add>, %10, %cst_10 [1] : vector<8x32xf32> to vector<8xf32>
    %14 = vector.shape_cast %13 : vector<8xf32> to vector<8x1xf32>
    %cst_11 = arith.constant 3.200000e+01 : f32
    %15 = vector.broadcast %cst_11 : f32 to vector<8x1xf32>
    %16 = arith.divf %14, %15 : vector<8x1xf32>
    %17 = vector.broadcast %16 : vector<8x1xf32> to vector<8x32xf32>
    %18 = arith.subf %10, %17 : vector<8x32xf32>
    %19 = arith.mulf %18, %18 : vector<8x32xf32>
    %cst_12 = arith.constant dense<0.000000e+00> : vector<8xf32>
    %20 = vector.multi_reduction <add>, %19, %cst_12 [1] : vector<8x32xf32> to vector<8xf32>
    %21 = vector.shape_cast %20 : vector<8xf32> to vector<8x1xf32>
    %cst_13 = arith.constant 3.200000e+01 : f32
    %22 = vector.broadcast %cst_13 : f32 to vector<8x1xf32>
    %23 = arith.divf %21, %22 : vector<8x1xf32>
    %24 = vector.broadcast %16 : vector<8x1xf32> to vector<8x32xf32>
    %25 = arith.subf %10, %24 : vector<8x32xf32>
    %cst_14 = arith.constant 9.99999974E-6 : f32
    %26 = vector.broadcast %cst_14 : f32 to vector<8x1xf32>
    %27 = arith.addf %23, %26 : vector<8x1xf32>
    %28 = math.rsqrt %27 : vector<8x1xf32>
    %29 = vector.broadcast %28 : vector<8x1xf32> to vector<8x32xf32>
    %30 = arith.mulf %25, %29 : vector<8x32xf32>
    %31 = vector.broadcast %11 : vector<1x32xf32> to vector<8x32xf32>
    %32 = arith.mulf %30, %31 : vector<8x32xf32>
    %33 = vector.broadcast %12 : vector<1x32xf32> to vector<8x32xf32>
    %34 = arith.addf %32, %33 : vector<8x32xf32>
    %cst_15 = arith.constant 0.000000e+00 : f32
    %35 = vector.broadcast %cst_15 : f32 to vector<8x32xf32>
    %36 = arith.maximumf %34, %35 : vector<8x32xf32>
    %c272 = arith.constant 272 : index
    %c0_16 = arith.constant 0 : index
    %37 = vector.load %arg2[%c272, %c0_16] : memref<544x128xf32, #tpu.memory_space<vmem>>, vector<32x3xf32>
    %cst_17 = arith.constant dense<0.000000e+00> : vector<8x3xf32>
    %38 = tpu.matmul %36, %37, %cst_17 {dimension_numbers = #tpu.dot_dimension_numbers<[1], [0], [0], [1], [0, 0, 1, 1], [], []>} : vector<8x32xf32>, vector<32x3xf32>, vector<8x3xf32> -> vector<8x3xf32>
    %c4 = arith.constant 4 : index
    %c0_18 = arith.constant 0 : index
    %39 = vector.load %arg3[%c4, %c0_18] : memref<16x128xf32, #tpu.memory_space<vmem>>, vector<1x3xf32>
    %40 = vector.broadcast %39 : vector<1x3xf32> to vector<8x3xf32>
    %41 = arith.addf %38, %40 : vector<8x3xf32>
    %cst_19 = arith.constant dense<0xFF800000> : vector<8xf32>
    %42 = vector.multi_reduction <maximumf>, %41, %cst_19 [1] : vector<8x3xf32> to vector<8xf32>
    %43 = vector.shape_cast %42 : vector<8xf32> to vector<8x1xf32>
    %44 = vector.broadcast %43 : vector<8x1xf32> to vector<8x3xf32>
    %45 = arith.subf %41, %44 : vector<8x3xf32>
    %46 = math.exp %45 : vector<8x3xf32>
    %cst_20 = arith.constant dense<0.000000e+00> : vector<8xf32>
    %47 = vector.multi_reduction <add>, %46, %cst_20 [1] : vector<8x3xf32> to vector<8xf32>
    %48 = vector.shape_cast %47 : vector<8xf32> to vector<8x1xf32>
    %49 = vector.broadcast %48 : vector<8x1xf32> to vector<8x3xf32>
    %50 = arith.divf %46, %49 : vector<8x3xf32>
    %c304 = arith.constant 304 : index
    %c0_21 = arith.constant 0 : index
    %51 = vector.load %arg2[%c304, %c0_21] : memref<544x128xf32, #tpu.memory_space<vmem>>, vector<3x128xf32>
    %cst_22 = arith.constant dense<0.000000e+00> : vector<8x128xf32>
    %52 = tpu.matmul %50, %51, %cst_22 {dimension_numbers = #tpu.dot_dimension_numbers<[1], [0], [0], [1], [0, 0, 1, 1], [], []>} : vector<8x3xf32>, vector<3x128xf32>, vector<8x128xf32> -> vector<8x128xf32>
    %53 = arith.mulf %5, %52 : vector<8x128xf32>
    %c312 = arith.constant 312 : index
    %c0_23 = arith.constant 0 : index
    %54 = vector.load %arg2[%c312, %c0_23] : memref<544x128xf32, #tpu.memory_space<vmem>>, vector<128x32xf32>
    %cst_24 = arith.constant dense<0.000000e+00> : vector<8x32xf32>
    %55 = tpu.matmul %53, %54, %cst_24 {dimension_numbers = #tpu.dot_dimension_numbers<[1], [0], [0], [1], [0, 0, 1, 1], [], []>} : vector<8x128xf32>, vector<128x32xf32>, vector<8x32xf32> -> vector<8x32xf32>
    %c5 = arith.constant 5 : index
    %c0_25 = arith.constant 0 : index
    %56 = vector.load %arg3[%c5, %c0_25] : memref<16x128xf32, #tpu.memory_space<vmem>>, vector<1x32xf32>
    %57 = vector.broadcast %56 : vector<1x32xf32> to vector<8x32xf32>
    %58 = arith.addf %55, %57 : vector<8x32xf32>
    %c6 = arith.constant 6 : index
    %c0_26 = arith.constant 0 : index
    %59 = vector.load %arg3[%c6, %c0_26] : memref<16x128xf32, #tpu.memory_space<vmem>>, vector<1x32xf32>
    %c7 = arith.constant 7 : index
    %c0_27 = arith.constant 0 : index
    %60 = vector.load %arg3[%c7, %c0_27] : memref<16x128xf32, #tpu.memory_space<vmem>>, vector<1x32xf32>
    %cst_28 = arith.constant dense<0.000000e+00> : vector<8xf32>
    %61 = vector.multi_reduction <add>, %58, %cst_28 [1] : vector<8x32xf32> to vector<8xf32>
    %62 = vector.shape_cast %61 : vector<8xf32> to vector<8x1xf32>
    %cst_29 = arith.constant 3.200000e+01 : f32
    %63 = vector.broadcast %cst_29 : f32 to vector<8x1xf32>
    %64 = arith.divf %62, %63 : vector<8x1xf32>
    %65 = vector.broadcast %64 : vector<8x1xf32> to vector<8x32xf32>
    %66 = arith.subf %58, %65 : vector<8x32xf32>
    %67 = arith.mulf %66, %66 : vector<8x32xf32>
    %cst_30 = arith.constant dense<0.000000e+00> : vector<8xf32>
    %68 = vector.multi_reduction <add>, %67, %cst_30 [1] : vector<8x32xf32> to vector<8xf32>
    %69 = vector.shape_cast %68 : vector<8xf32> to vector<8x1xf32>
    %cst_31 = arith.constant 3.200000e+01 : f32
    %70 = vector.broadcast %cst_31 : f32 to vector<8x1xf32>
    %71 = arith.divf %69, %70 : vector<8x1xf32>
    %72 = vector.broadcast %64 : vector<8x1xf32> to vector<8x32xf32>
    %73 = arith.subf %58, %72 : vector<8x32xf32>
    %cst_32 = arith.constant 9.99999974E-6 : f32
    %74 = vector.broadcast %cst_32 : f32 to vector<8x1xf32>
    %75 = arith.addf %71, %74 : vector<8x1xf32>
    %76 = math.rsqrt %75 : vector<8x1xf32>
    %77 = vector.broadcast %76 : vector<8x1xf32> to vector<8x32xf32>
    %78 = arith.mulf %73, %77 : vector<8x32xf32>
    %79 = vector.broadcast %59 : vector<1x32xf32> to vector<8x32xf32>
    %80 = arith.mulf %78, %79 : vector<8x32xf32>
    %81 = vector.broadcast %60 : vector<1x32xf32> to vector<8x32xf32>
    %82 = arith.addf %80, %81 : vector<8x32xf32>
    %cst_33 = arith.constant 0.000000e+00 : f32
    %83 = vector.broadcast %cst_33 : f32 to vector<8x32xf32>
    %84 = arith.maximumf %82, %83 : vector<8x32xf32>
    %c440 = arith.constant 440 : index
    %c0_34 = arith.constant 0 : index
    %85 = vector.load %arg2[%c440, %c0_34] : memref<544x128xf32, #tpu.memory_space<vmem>>, vector<32x64xf32>
    %cst_35 = arith.constant dense<0.000000e+00> : vector<8x64xf32>
    %86 = tpu.matmul %84, %85, %cst_35 {dimension_numbers = #tpu.dot_dimension_numbers<[1], [0], [0], [1], [0, 0, 1, 1], [], []>} : vector<8x32xf32>, vector<32x64xf32>, vector<8x64xf32> -> vector<8x64xf32>
    %c8 = arith.constant 8 : index
    %c0_36 = arith.constant 0 : index
    %87 = vector.load %arg3[%c8, %c0_36] : memref<16x128xf32, #tpu.memory_space<vmem>>, vector<1x64xf32>
    %88 = vector.broadcast %87 : vector<1x64xf32> to vector<8x64xf32>
    %89 = arith.addf %86, %88 : vector<8x64xf32>
    %cst_37 = arith.constant 0.000000e+00 : f32
    %90 = vector.broadcast %cst_37 : f32 to vector<8x64xf32>
    %91 = arith.maximumf %89, %90 : vector<8x64xf32>
    %c472 = arith.constant 472 : index
    %c0_38 = arith.constant 0 : index
    %92 = vector.load %arg2[%c472, %c0_38] : memref<544x128xf32, #tpu.memory_space<vmem>>, vector<64x128xf32>
    %cst_39 = arith.constant dense<0.000000e+00> : vector<8x128xf32>
    %93 = tpu.matmul %91, %92, %cst_39 {dimension_numbers = #tpu.dot_dimension_numbers<[1], [0], [0], [1], [0, 0, 1, 1], [], []>} : vector<8x64xf32>, vector<64x128xf32>, vector<8x128xf32> -> vector<8x128xf32>
    %c9 = arith.constant 9 : index
    %c0_40 = arith.constant 0 : index
    %94 = vector.load %arg3[%c9, %c0_40] : memref<16x128xf32, #tpu.memory_space<vmem>>, vector<1x128xf32>
    %95 = vector.broadcast %94 : vector<1x128xf32> to vector<8x128xf32>
    %96 = arith.addf %93, %95 : vector<8x128xf32>
    %c536 = arith.constant 536 : index
    %c0_41 = arith.constant 0 : index
    %97 = vector.load %arg2[%c536, %c0_41] : memref<544x128xf32, #tpu.memory_space<vmem>>, vector<3x128xf32>
    %cst_42 = arith.constant dense<0.000000e+00> : vector<8x128xf32>
    %98 = tpu.matmul %50, %97, %cst_42 {dimension_numbers = #tpu.dot_dimension_numbers<[1], [0], [0], [1], [0, 0, 1, 1], [], []>} : vector<8x3xf32>, vector<3x128xf32>, vector<8x128xf32> -> vector<8x128xf32>
    %99 = arith.addf %96, %98 : vector<8x128xf32>
    %c0_43 = arith.constant 0 : index
    %c0_44 = arith.constant 0 : index
    %100 = vector.load %arg4[%c0_43, %c0_44] : memref<8x128xf32, #tpu.memory_space<vmem>>, vector<8x128xf32>
    tpu.vector_store %arg4[%c0_43, %c0_44], %99 {strides = array<i32>} : memref<8x128xf32, #tpu.memory_space<vmem>>, vector<8x128xf32>,
    return
  }
  func.func @transform_0(%arg0: i32) -> (i32, i32) {
    %c0_i32 = arith.constant 0 : i32
    %c0_i32_0 = arith.constant 0 : i32
    return %arg0, %c0_i32 : i32, i32
  }
  func.func @transform_1(%arg0: i32) -> (i32, i32) {
    %c0_i32 = arith.constant 0 : i32
    %c0_i32_0 = arith.constant 0 : i32
    %c0_i32_1 = arith.constant 0 : i32
    return %c0_i32, %c0_i32_0 : i32, i32
  }
  func.func @transform_2(%arg0: i32) -> (i32, i32) {
    %c0_i32 = arith.constant 0 : i32
    %c0_i32_0 = arith.constant 0 : i32
    %c0_i32_1 = arith.constant 0 : i32
    return %c0_i32, %c0_i32_0 : i32, i32
  }
  func.func @transform_3(%arg0: i32) -> (i32, i32) {
    %c0_i32 = arith.constant 0 : i32
    %c0_i32_0 = arith.constant 0 : i32
    return %arg0, %c0_i32 : i32, i32
  }
}

</mosaic_0001>

<bundles_post_ra>
// kernel: tpu_custom_call.1
= control target key start
LH: loop header
LB: loop body
LE: loop exit
PB: predicated region body
PF: predicated region fallthrough
CT: control target
= control target key end

     0   :  { %8 = vsyncpa [#allocation3], 0  ;;  %s655_s0 = inlined_call_operand.hbm [shape: f32[8,144], index: 0, kind: input, shape index: {}]   ;;  %s656_s1 = inlined_call_operand.hbm [shape: f32[544,128], index: 1, kind: input, shape index: {}]   ;;  %s657_s2 = inlined_call_operand.hbm [shape: f32[16,128], index: 2, kind: input, shape index: {}]   ;;  %s658_s3 = inlined_call_operand.hbm [shape: f32[8,128], index: 3, kind: output, shape index: {}]  }
   0x1   :  { %9 = vsyncpa [#allocation6], 0  ;;  %s26_s14 = sshll.u32 %s656_s1, 4  ;;  %s27_s14 = int_to_ptr.hbm [resolvable:$true] %s26_s14 }
   0x2   :  { %10 = vsyncpa [#allocation4], 0  ;;  %s596_s15 = smov [#allocation5]   ;;  %s16_s19 = sshll.u32 %s655_s0, 4  ;;  %s17_s19 = int_to_ptr.hbm [resolvable:$true] %s16_s19 }
   0x3   :  { %s28_s16 = sshll.u32 %s596_s15, 4  ;;  %s597_s20 = smov 128   ;;  %s29_s16 = int_to_ptr.vmem [resolvable:$true] %s28_s16 }
   0x4   :  { %s598_s21 = smov 8   ;;  %s599_s22 = smov [#allocation2]  }
   0x5   :  { %34 = dma.hbm_to_vmem [thread:$0]  %s27_s14, 8704, %s29_s16, [#allocation6], %s597_s20, %s597_s20, %s598_s21  }
   0x6   :  { %s18_s23 = sshll.u32 %s599_s22, 4  ;;  %s39_s26 = sshll.u32 %s657_s2, 4  ;;  %s19_s23 = int_to_ptr.vmem [resolvable:$true] %s18_s23  ;;  %s40_s26 = int_to_ptr.hbm [resolvable:$true] %s39_s26 }
   0x7   :  { %21 = dma.hbm_to_vmem [thread:$0]  %s17_s19, 256, %s19_s23, [#allocation3]  }
   0x8   :  { %s600_s1 = smov [#allocation7]  }
   0x9   :  { %s41_s27 = sshll.u32 %s600_s1, 4  ;;  %s42_s27 = int_to_ptr.vmem [resolvable:$true] %s41_s27 }
   0xa   :  { %47 = dma.hbm_to_vmem [thread:$0]  %s40_s26, 256, %s42_s27, [#allocation6], %s597_s20, %s597_s20, %s598_s21  }
   0xb   :  { %590 = dma.done.wait [#allocation3], 256  }
   0xc   :  { %591 = vsyncadd [#allocation3], 4294967040 }
   0xd   :  { %592 = dma.done.wait [#allocation6], 8960  }
   0xe   :  { %593 = vsyncadd [#allocation6], 4294958336  ;;  %v77_v0 = vld [vmem:[#allocation5 + $0x78] sm:$0xff]  ;;  %v76_v1 = vld [vmem:[#allocation5 + $0x70] sm:$0xff]  ;;  %vm82_vm0 = vcmask 130048   ;;  %vm166_vm1 = vcmask 261120  }
   0xf   :  { %86 = vmatpush.msra.mxu0 %v77_v0  ;;  %v75_v2 = vld [vmem:[#allocation5 + $0x68] sm:$0xff]  ;;  %v74_v3 = vld [vmem:[#allocation5 + $0x60] sm:$0xff]  ;;  %v73_v4 = vld [vmem:[#allocation5 + $0x58] sm:$0xff]  ;;  %v601_v45 = vmov 32.0   ;;  %vm230_vm6 = vcmask 23552   ;;  %vm259_vm7 = vcmask 1042432  }
  0x10   :  { %v79_v5 = vld [vmem:[#allocation5 + $0x88] sm:$0xff]  ;;  %v78_v6 = vld [vmem:[#allocation5 + $0x80] sm:$0xff]  ;;  %v61_v7 = vld [vmem:[#allocation2 + $0x8] sm:$0xff]  ;;  %484 = vrcp.f32 %v601_v45  ;;  %vm391_vm15 = vcmask 523264   ;;  %s602_s0 = smov [#allocation8]   ;;  %s448_s30 = sshll.u32 %s658_s3, 4  ;;  %s449_s30 = int_to_ptr.hbm [resolvable:$true] %s448_s30 }
  0x11   :  { %87 = vmatpush.msra.mxu0 %v76_v1  ;;  %120 = vmatpush.msra.mxu1 %v79_v5  ;;  %v141_v8 = vld [vmem:[#allocation5 + $0x108] sm:$0xff]  ;;  %v140_v9 = vld [vmem:[#allocation5 + $0x100] sm:$0xff]  ;;  %v72_v10 = vld [vmem:[#allocation5 + $0x50] sm:$0xff]  ;;  %s446_s2 = sshll.u32 %s602_s0, 4  ;;  %s447_s2 = int_to_ptr.vmem [resolvable:$true] %s446_s2 }
  0x12   :  { %144 = vmatpush.msra.mxu2 %v141_v8  ;;  %v139_v11 = vld [vmem:[#allocation5 + $0xf8] sm:$0xff]  ;;  %v71_v12 = vld [vmem:[#allocation5 + $0x48] sm:$0xff]  ;;  %v70_v13 = vld [vmem:[#allocation5 + $0x40] sm:$0xff] }
  0x13   :  { %88 = vmatpush.msra.mxu0 %v75_v2  ;;  %121 = vmatpush.msra.mxu1 %v78_v6  ;;  %v138_v14 = vld [vmem:[#allocation5 + $0xf0] sm:$0xff]  ;;  %v137_v15 = vld [vmem:[#allocation5 + $0xe8] sm:$0xff]  ;;  %v69_v16 = vld [vmem:[#allocation5 + $0x38] sm:$0xff] }
  0x14   :  { %459 = vmatmul.msk.f32.vlgmr.msra.gmra.mxu1 %vm82_vm0, %v61_v7  ;;  %145 = vmatpush.msra.mxu2 %v140_v9  ;;  %v136_v17 = vld [vmem:[#allocation5 + $0xe0] sm:$0xff]  ;;  %v68_v18 = vld [vmem:[#allocation5 + $0x30] sm:$0xff]  ;;  %v135_v19 = vld [vmem:[#allocation5 + $0xd8] sm:$0xff] }
  0x15   :  { %89 = vmatpush.msra.mxu0 %v74_v3  ;;  %v67_v20 = vld [vmem:[#allocation5 + $0x28] sm:$0xff]  ;;  %v134_v21 = vld [vmem:[#allocation5 + $0xd0] sm:$0xff]  ;;  %v66_v22 = vld [vmem:[#allocation5 + $0x20] sm:$0xff] }
  0x16   :  { %146 = vmatpush.msra.mxu2 %v139_v11  ;;  %v133_v23 = vld [vmem:[#allocation5 + $0xc8] sm:$0xff]  ;;  %v65_v24 = vld [vmem:[#allocation5 + $0x18] sm:$0xff]  ;;  %v132_v25 = vld [vmem:[#allocation5 + $0xc0] sm:$0xff]  ;;  %v485_v46 = vpop.eup %484 }
  0x17   :  { %90 = vmatpush.msra.mxu0 %v73_v4  ;;  %v64_v26 = vld [vmem:[#allocation5 + $0x10] sm:$0xff]  ;;  %v131_v27 = vld [vmem:[#allocation5 + $0xb8] sm:$0xff]  ;;  %v63_v28 = vld [vmem:[#allocation5 + $0x8] sm:$0xff]  ;;  %v171_v47 = vmul.f32 32.0, %v485_v46  ;;  %vm175_vm2 = vweird.f32 %v485_v46 }
  0x18   :  { %147 = vmatpush.msra.mxu2 %v138_v14  ;;  %v130_v29 = vld [vmem:[#allocation5 + $0xb0] sm:$0xff]  ;;  %v62_v30 = vld [vmem:[#allocation5] sm:$0xff]  ;;  %v129_v32 = vld [vmem:[#allocation5 + $0xa8] sm:$0xff] }
  0x19   :  { %91 = vmatpush.msra.mxu0 %v72_v10  ;;  %v60_v31 = vld [vmem:[#allocation2] sm:$0xff]  ;;  %v128_v33 = vld [vmem:[#allocation5 + $0xa0] sm:$0xff]  ;;  %v127_v34 = vld [vmem:[#allocation5 + $0x98] sm:$0xff]  ;;  %v172_v48 = vsub.f32 1.0, %v171_v47 }
  0x1a   :  { %148 = vmatpush.msra.mxu2 %v137_v15  ;;  %v126_v35 = vld [vmem:[#allocation5 + $0x90] sm:$0xff]  ;;  %v474_v36 = vld [vmem:[#allocation7] ss:$0 sm:$0xff]  ;;  %v475_v41 = vld [vmem:[#allocation7 + $0x1] ss:$0 sm:$0xff] }
  0x1b   :  { %92 = vmatpush.msra.mxu0 %v71_v12  ;;  %v173_v49 = vmul.f32 %v485_v46, %v172_v48  ;;  %v204_v57 = vld [vmem:[#allocation5 + $0x128] sm:$0xff]  ;;  %v203_v58 = vld [vmem:[#allocation5 + $0x120] sm:$0xff]  ;;  %v202_v59 = vld [vmem:[#allocation5 + $0x118] sm:$0xff] }
  0x1c   :  { %149 = vmatpush.msra.mxu2 %v136_v17  ;;  %222 = vmatpush.msra.mxu3 %v204_v57  ;;  %v201_v60 = vld [vmem:[#allocation5 + $0x110] sm:$0xff]  ;;  %v476_v6 = vld [vmem:[#allocation7 + $0x2] ss:$0 sm:$0xff]  ;;  %v477_v9 = vld [vmem:[#allocation7 + $0x3] ss:$0 sm:$0xff] }
  0x1d   :  { %93 = vmatpush.msra.mxu0 %v70_v13  ;;  %v174_v50 = vadd.f32 %v485_v46, %v173_v49  ;;  %v478_v13 = vld [vmem:[#allocation7 + $0x4] ss:$0 sm:$0xff]  ;;  %v286_v45 = vld [vmem:[#allocation5 + $0x148] sm:$0xff] }
  0x1e   :  { %150 = vmatpush.msra.mxu2 %v135_v19  ;;  %223 = vmatpush.msra.mxu3 %v203_v58 }
  0x1f   :  { %94 = vmatpush.msra.mxu0 %v69_v16  ;;  %v636_v51 = vsel %vm175_vm2, %v485_v46, %v174_v50 }
  0x20   :  { %151 = vmatpush.msra.mxu2 %v134_v21  ;;  %224 = vmatpush.msra.mxu3 %v202_v59 }
  0x21   :  { %95 = vmatpush.msra.mxu0 %v68_v18 }
  0x22   :  { %152 = vmatpush.msra.mxu2 %v133_v23  ;;  %225 = vmatpush.msra.mxu3 %v201_v60  ;;  %v415_v23 = vld [vmem:[#allocation5 + $0x218] sm:$0x7] }
  0x23   :  { %96 = vmatpush.msra.mxu0 %v67_v20 }
  0x24   :  { %153 = vmatpush.msra.mxu2 %v132_v25  ;;  %v298_v25 = vld [vmem:[#allocation5 + $0x1a8] sm:$0xff] }
  0x25   :  { %97 = vmatpush.msra.mxu0 %v66_v22  ;;  %v255_v22 = vld [vmem:[#allocation5 + $0x130] sm:$0x7] }
  0x26   :  { %154 = vmatpush.msra.mxu2 %v131_v27  ;;  %461 = vmatpush.msk.msrb.mxu1 %vm259_vm7, %v255_v22  ;;  %v296_v27 = vld [vmem:[#allocation5 + $0x198] sm:$0xff] }
  0x27   :  { %98 = vmatpush.msra.mxu0 %v65_v24  ;;  %v299_v24 = vld [vmem:[#allocation5 + $0x1b0] sm:$0xff] }
  0x28   :  { %155 = vmatpush.msra.mxu2 %v130_v29  ;;  %302 = vmatpush.msrb.mxu3 %v299_v24  ;;  %v294_v29 = vld [vmem:[#allocation5 + $0x188] sm:$0xff] }
  0x29   :  { %99 = vmatpush.msra.mxu0 %v64_v26  ;;  %v297_v26 = vld [vmem:[#allocation5 + $0x1a0] sm:$0xff]  ;;  %v383_v24 = vld [vmem:[#allocation5 + $0x1e8] sm:$0xff] }
  0x2a   :  { %156 = vmatpush.msra.mxu2 %v129_v32  ;;  %303 = vmatpush.msrb.mxu3 %v298_v25  ;;  %v292_v32 = vld [vmem:[#allocation5 + $0x178] sm:$0xff]  ;;  %v382_v25 = vld [vmem:[#allocation5 + $0x1e0] sm:$0xff] }
  0x2b   :  { %100 = vmatpush.msra.mxu0 %v63_v28  ;;  %v295_v28 = vld [vmem:[#allocation5 + $0x190] sm:$0xff] }
  0x2c   :  { %157 = vmatpush.msra.mxu2 %v128_v33  ;;  %304 = vmatpush.msrb.mxu3 %v297_v26  ;;  %v291_v33 = vld [vmem:[#allocation5 + $0x170] sm:$0xff]  ;;  %v381_v26 = vld [vmem:[#allocation5 + $0x1d8] sm:$0xff] }
  0x2d   :  { %101 = vmatpush.msra.mxu0 %v62_v30  ;;  %v293_v30 = vld [vmem:[#allocation5 + $0x180] sm:$0xff] }
  0x2e   :  { %102 = vmatmul.f32.vlgmr.msra.gmra.mxu0 %v60_v31  ;;  %158 = vmatpush.msra.mxu2 %v127_v34  ;;  %v290_v34 = vld [vmem:[#allocation5 + $0x168] sm:$0xff] }
  0x2f   :  { %465 = vmatpush.msk.msrb.mxu0 %vm259_vm7, %v415_v23  ;;  %305 = vmatpush.msrb.mxu3 %v296_v27  ;;  %v482_v27 = vld [vmem:[#allocation7 + $0x8] ss:$0 sm:$0xff] }
  0x30   :  { %159 = vmatpush.msra.mxu2 %v126_v35  ;;  %v289_v35 = vld [vmem:[#allocation5 + $0x160] sm:$0xff] }
  0x31   :  { %306 = vmatpush.msrb.mxu3 %v295_v28 }
  0x33   :  { %307 = vmatpush.msrb.mxu3 %v294_v29 }
  0x35   :  { %308 = vmatpush.msrb.mxu3 %v293_v30 }
  0x37   :  { %309 = vmatpush.msrb.mxu3 %v292_v32 }
  0x39   :  { %310 = vmatpush.msrb.mxu3 %v291_v33 }
  0x3b   :  { %311 = vmatpush.msrb.mxu3 %v290_v34 }
  0x3d   :  { %312 = vmatpush.msrb.mxu3 %v289_v35 }
  0x91   :  { %v123_v38 = vpop.f32.mrf.mxu1 }
  0xab   :  { %v103_v37 = vpop.f32.mrf.mxu0 }
  0xac   :  { %v104_v39 = vadd.f32 %v474_v36, %v103_v37 }
  0xae   :  { %v632_v40 = vadd.f32 %v123_v38, %v104_v39  ;;  %v288_v38 = vld [vmem:[#allocation5 + $0x158] sm:$0xff] }
  0xaf   :  { %313 = vmatpush.msrb.mxu3 %v288_v38 }
  0xb0   :  { %160 = vmatmul.f32.vlgmr.msra.gmra.mxu2 %v632_v40 }
 0x133   :  { %v161_v42 = vpop.f32.mrf.mxu2 }
 0x134   :  { %v162_v43 = vadd.f32 %v475_v41, %v161_v42  ;;  %v287_v41 = vld [vmem:[#allocation5 + $0x150] sm:$0xff] }
 0x135   :  { %314 = vmatpush.msrb.mxu3 %v287_v41 }
 0x136   :  { %v167_v44 = vsel %vm166_vm1, %v162_v43, 0.0 }
 0x137   :  { %168 = vadd.xlane.f32.xlu0 %v167_v44  ;;  %315 = vmatpush.msrb.mxu3 %v286_v45 }
 0x1aa   :  { %v169_v52 = vpop.xlane.xlu0 %168 }
 0x1ab   :  { %v177_v53 = vmul.f32 %v636_v51, %v169_v52  ;;  %v285_v52 = vld [vmem:[#allocation5 + $0x140] sm:$0xff] }
 0x1ac   :  { %316 = vmatpush.msrb.mxu3 %v285_v52 }
 0x1ad   :  { %v178_v54 = vsub.f32 %v162_v43, %v177_v53  ;;  %v284_v53 = vld [vmem:[#allocation5 + $0x138] sm:$0xff] }
 0x1ae   :  { %317 = vmatpush.msrb.mxu3 %v284_v53 }
 0x1af   :  { %v179_v55 = vmul.f32 %v178_v54, %v178_v54 }
 0x1b1   :  { %v180_v56 = vsel %vm166_vm1, %v179_v55, 0.0 }
 0x1b2   :  { %181 = vadd.xlane.f32.xlu0 %v180_v56  ;;  %v479_v56 = vld [vmem:[#allocation7 + $0x5] ss:$0 sm:$0xff] }
 0x225   :  { %v182_v61 = vpop.xlane.xlu0 %181 }
 0x226   :  { %v183_v62 = vmul.f32 %v182_v61, %v636_v51 }
 0x228   :  { %v184_v63 = vadd.f32 1e-05, %v183_v62 }
 0x22a   :  { %486 = vrsqrt.f32 %v184_v63  ;;  %vm191_vm4 = vweird.f32 %v184_v63 }
 0x230   :  { %v487_v0 = vpop.eup %486 }
 0x231   :  { %v186_v1 = vmul.f32 %v487_v0, %v184_v63  ;;  %vm192_vm3 = vweird.f32 %v487_v0 }
 0x232   :  { %vm193_vm5 = vmor %vm191_vm4, %vm192_vm3 }
 0x233   :  { %v187_v2 = vmul.f32 %v487_v0, %v186_v1  ;;  %v354_v1 = vld [vmem:[#allocation5 + $0x1d0] sm:$0xff] }
 0x234   :  { %372 = vmatpush.msra.mxu1 %v354_v1 }
 0x235   :  { %v188_v3 = vmul.f32 0.5, %v187_v2  ;;  %v353_v2 = vld [vmem:[#allocation5 + $0x1c8] sm:$0xff] }
 0x236   :  { %373 = vmatpush.msra.mxu1 %v353_v2 }
 0x237   :  { %v189_v4 = vsub.f32 1.5, %v188_v3  ;;  %v352_v3 = vld [vmem:[#allocation5 + $0x1c0] sm:$0xff] }
 0x238   :  { %374 = vmatpush.msra.mxu1 %v352_v3 }
 0x239   :  { %v190_v5 = vmul.f32 %v487_v0, %v189_v4  ;;  %v388_v4 = vld [vmem:[#allocation5 + $0x210] sm:$0xff] }
 0x23b   :  { %v194_v7 = vsel %vm193_vm5, %v487_v0, %v190_v5  ;;  %v387_v5 = vld [vmem:[#allocation5 + $0x208] sm:$0xff] }
 0x23c   :  { %v195_v8 = vmul.f32 %v194_v7, %v178_v54 }
 0x23e   :  { %v197_v10 = vmul.f32 %v476_v6, %v195_v8  ;;  %v386_v8 = vld [vmem:[#allocation5 + $0x200] sm:$0xff] }
 0x240   :  { %v199_v11 = vadd.f32 %v477_v9, %v197_v10  ;;  %v385_v10 = vld [vmem:[#allocation5 + $0x1f8] sm:$0xff] }
 0x242   :  { %v200_v12 = vmax.f32 %v199_v11, 0.0  ;;  %v384_v11 = vld [vmem:[#allocation5 + $0x1f0] sm:$0xff] }
 0x244   :  { %460 = vmatmul.msk.f32.vlgmr.msra.gmra.mxu3 %vm166_vm1, %v200_v12 }
 0x2c7   :  { %v227_v14 = vpop.f32.mrf.mxu3 }
 0x2c8   :  { %v228_v15 = vadd.f32 %v478_v13, %v227_v14 }
 0x2ca   :  { %v231_v16 = vsel %vm230_vm6, %v228_v15, -inf }
 0x2cb   :  { %232 = vmax.xlane.f32.xlu1 %v231_v16 }
 0x33e   :  { %v233_v17 = vpop.xlane.xlu1 %232 }
 0x33f   :  { %v234_v18 = vsub.f32 %v228_v15, %v233_v17 }
 0x341   :  { %v235_v19 = vmul.f32 1.442695, %v234_v18  ;;  %v480_v18 = vld [vmem:[#allocation7 + $0x6] ss:$0 sm:$0xff] }
 0x343   :  { %488 = vpow2.f32 %v235_v19 }
 0x349   :  { %v489_v20 = vpop.eup %488 }
 0x34a   :  { %v237_v21 = vsel %vm230_vm6, %v489_v20, 0.0 }
 0x34b   :  { %238 = vadd.xlane.f32.xlu1 %v237_v21 }
 0x3be   :  { %v239_v31 = vpop.xlane.xlu1 %238 }
 0x3bf   :  { %490 = vrcp.f32 %v239_v31  ;;  %v251_v42 = vand.u32 2147483648, %v239_v31  ;;  %v249_v44 = vand.u32 2147483647, %v239_v31  ;;  %vm245_vm9 = vweird.f32 %v239_v31 }
 0x3c1   :  { %v252_v47 = vor.u32 1.1754944e-38, %v251_v42  ;;  %vm250_vm11 = vcmp.eq.f32.partialorder %v249_v44, 8.507059e+37 }
 0x3c5   :  { %v491_v36 = vpop.eup %490 }
 0x3c6   :  { %v241_v37 = vmul.f32 %v491_v36, %v239_v31  ;;  %vm246_vm8 = vweird.f32 %v491_v36  ;;  %v483_v31 = vld [vmem:[#allocation7 + $0x9] ss:$0 sm:$0xff] }
 0x3c7   :  { %vm247_vm10 = vmor %vm245_vm9, %vm246_vm8 }
 0x3c8   :  { %v242_v39 = vsub.f32 1.0, %v241_v37 }
 0x3ca   :  { %v243_v43 = vmul.f32 %v491_v36, %v242_v39 }
 0x3cc   :  { %v244_v46 = vadd.f32 %v491_v36, %v243_v43 }
 0x3ce   :  { %v248_v48 = vsel %vm247_vm10, %v491_v36, %v244_v46 }
 0x3cf   :  { %v253_v49 = vsel %vm250_vm11, %v252_v47, %v248_v48 }
 0x3d0   :  { %v254_v50 = vmul.f32 %v489_v20, %v253_v49  ;;  %v481_v20 = vld [vmem:[#allocation7 + $0x7] ss:$0 sm:$0xff] }
 0x3d2   :  { %462 = vmatmul.msk.f32.vlgmr.msrb.gmra.mxu1 %vm230_vm6, %v254_v50  ;;  %466 = vmatmul.msk.f32.vlgmr.msrb.gmra.mxu0 %vm230_vm6, %v254_v50 }
 0x44f   :  { %v280_v54 = vpop.f32.mrf.mxu1  ;;  %v436_v34 = vpop.f32.mrf.mxu0 }
 0x450   :  { %v283_v55 = vmul.f32 %v280_v54, %v632_v40  ;;  %v351_v40 = vld [vmem:[#allocation5 + $0x1b8] sm:$0xff] }
 0x451   :  { %375 = vmatpush.msra.mxu1 %v351_v40 }
 0x452   :  { %318 = vmatmul.f32.vlgmr.msrb.gmra.mxu3 %v283_v55 }
 0x453   :  { %403 = vmatpush.msrb.mxu1 %v388_v4 }
 0x455   :  { %404 = vmatpush.msrb.mxu1 %v387_v5 }
 0x457   :  { %405 = vmatpush.msrb.mxu1 %v386_v8 }
 0x459   :  { %406 = vmatpush.msrb.mxu1 %v385_v10 }
 0x45b   :  { %407 = vmatpush.msrb.mxu1 %v384_v11 }
 0x45d   :  { %408 = vmatpush.msrb.mxu1 %v383_v24 }
 0x45f   :  { %409 = vmatpush.msrb.mxu1 %v382_v25 }
 0x461   :  { %410 = vmatpush.msrb.mxu1 %v381_v26 }
 0x4d5   :  { %v319_v57 = vpop.f32.mrf.mxu3 }
 0x4d6   :  { %v320_v58 = vadd.f32 %v479_v56, %v319_v57 }
 0x4d8   :  { %v324_v59 = vsel %vm166_vm1, %v320_v58, 0.0 }
 0x4d9   :  { %325 = vadd.xlane.f32.xlu2 %v324_v59 }
 0x54c   :  { %v326_v60 = vpop.xlane.xlu2 %325 }
 0x54d   :  { %v327_v61 = vmul.f32 %v326_v60, %v636_v51 }
 0x54f   :  { %v328_v62 = vsub.f32 %v320_v58, %v327_v61 }
 0x551   :  { %v329_v63 = vmul.f32 %v328_v62, %v328_v62 }
 0x553   :  { %v330_v0 = vsel %vm166_vm1, %v329_v63, 0.0 }
 0x554   :  { %331 = vadd.xlane.f32.xlu2 %v330_v0 }
 0x5c7   :  { %v332_v6 = vpop.xlane.xlu2 %331 }
 0x5c8   :  { %v333_v7 = vmul.f32 %v332_v6, %v636_v51 }
 0x5ca   :  { %v334_v9 = vadd.f32 1e-05, %v333_v7 }
 0x5cc   :  { %492 = vrsqrt.f32 %v334_v9  ;;  %vm341_vm13 = vweird.f32 %v334_v9 }
 0x5d2   :  { %v493_v12 = vpop.eup %492 }
 0x5d3   :  { %v336_v13 = vmul.f32 %v493_v12, %v334_v9  ;;  %vm342_vm12 = vweird.f32 %v493_v12 }
 0x5d4   :  { %vm343_vm14 = vmor %vm341_vm13, %vm342_vm12 }
 0x5d5   :  { %v337_v14 = vmul.f32 %v493_v12, %v336_v13 }
 0x5d7   :  { %v338_v15 = vmul.f32 0.5, %v337_v14 }
 0x5d9   :  { %v339_v16 = vsub.f32 1.5, %v338_v15 }
 0x5db   :  { %v340_v17 = vmul.f32 %v493_v12, %v339_v16 }
 0x5dd   :  { %v344_v51 = vsel %vm343_vm14, %v493_v12, %v340_v17 }
 0x5de   :  { %v345_v19 = vmul.f32 %v344_v51, %v328_v62 }
 0x5e0   :  { %v347_v21 = vmul.f32 %v480_v18, %v345_v19 }
 0x5e2   :  { %v349_v22 = vadd.f32 %v481_v20, %v347_v21 }
 0x5e4   :  { %v350_v23 = vmax.f32 %v349_v22, 0.0 }
 0x5e6   :  { %463 = vmatmul.msk.f32.vlgmr.msra.gmra.mxu1 %vm166_vm1, %v350_v23 }
 0x663   :  { %v377_v28 = vpop.f32.mrf.mxu1 }
 0x664   :  { %v378_v29 = vadd.f32 %v482_v27, %v377_v28 }
 0x666   :  { %v380_v30 = vmax.f32 %v378_v29, 0.0 }
 0x668   :  { %464 = vmatmul.msk.f32.vlgmr.msrb.gmra.mxu1 %vm391_vm15, %v380_v30 }
 0x6e5   :  { %v412_v32 = vpop.f32.mrf.mxu1 }
 0x6e6   :  { %v413_v33 = vadd.f32 %v483_v31, %v412_v32 }
 0x6e8   :  { %v439_v35 = vadd.f32 %v436_v34, %v413_v33 }
 0x6ea   :  { %440 = vst [vmem:[#allocation8] sm:$0xff] %v439_v35 }
 0x6eb   :  { %451 = dma.vmem_to_hbm [thread:$0]  %s447_s2, 128, %s449_s30, [#allocation4]  }
 0x6ec   :  { %594 = dma.done.wait [#allocation4], 128  }
 0x6ed   :  { %595 = vsyncadd [#allocation4], 4294967168 }
 0x6ee   :  { %456 = vsyncpa [#allocation3], 1 }
 0x6ef   :  { %457 = vsyncpa [#allocation6], 1 }
 0x6f0   :  { %458 = vsyncpa [#allocation4], 1 }

</bundles_post_ra>
